<compile_context>
chip_gen: v5e
topology: v5e:2x2
jax: 0.10.0
libtpu: 0.0.40
codegen_flags: <defaults>
</compile_context>

<pallas_src>
import jax
import jax.numpy as jnp
from jax.experimental import pallas as pl
from jax.experimental.pallas import tpu as pltpu


def _round_up(n, m):
    return ((n + m - 1) // m) * m


def _spec(block_shape, index_map, *, single_buffer=False):
    """BlockSpec helper: constant-index operands request a single pipeline
    buffer (halves their resident VMEM).  Falls back to default (double)
    buffering if this jax version does not expose pipeline_mode / Buffered."""
    if single_buffer:
        try:
            return pl.BlockSpec(block_shape, index_map,
                                pipeline_mode=pl.Buffered(1))
        except Exception:
            pass
    return pl.BlockSpec(block_shape, index_map)


def _icnn_approx_max_kernel(x_ref, w0_ref, b0_ref, w1_ref, b1_ref, u0_ref,
                            w2_ref, b2_ref, l_ref, lb_ref,
                            o_ref, icnn_sc, boxmax_sc):
    """grid = (batch_tiles, box_col_tiles).

    Axis 0 ("parallel") streams batch tiles (megacore-shardable); axis 1
    ("arbitrary") streams column tiles of the packed box matrix L with a
    running row-max held in VMEM scratch.  In the common case L is fully
    resident (NC == 1) and the whole body runs once per batch tile."""
    j = pl.program_id(1)

    xb = x_ref[...].astype(jnp.bfloat16)          # in-kernel cast, no HBM copy

    # Box head.  Column 0 of L is the packed u1 (x @ U1.T) vector; its lb entry
    # is -inf so it never wins the row-max, but its raw matmul value feeds the
    # ICNN head below.  MXU bf16 in / f32 accumulation.
    xl = jnp.dot(xb, l_ref[...], preferred_element_type=jnp.float32)  # (TB, TN)
    box = xl + lb_ref[...]

    # --- ICNN trunk: once per batch tile (first column step). ----------------
    @pl.when(j == 0)
    def _():
        # relu(x @ W0 + b0)
        h1 = jnp.dot(xb, w0_ref[...],
                     preferred_element_type=jnp.float32) + b0_ref[...]
        h1 = jnp.maximum(h1, 0.0)

        # relu(h1 @ W1 + b1 + x @ U0)
        h2 = (jnp.dot(h1.astype(jnp.bfloat16), w1_ref[...],
                      preferred_element_type=jnp.float32)
              + b1_ref[...]
              + jnp.dot(xb, u0_ref[...], preferred_element_type=jnp.float32))
        h2 = jnp.maximum(h2, 0.0)

        # out_features == 1 head: VPU multiply + XLU lane-reduce for h2 @ W2.T;
        # x @ U1.T is recovered from column 0 of the L matmul (mask + reduce
        # keeps the lowering shape-friendly).
        col0 = jax.lax.broadcasted_iota(jnp.int32, xl.shape, 1) == 0
        u1x = jnp.sum(jnp.where(col0, xl, 0.0), axis=1, keepdims=True)
        icnn_sc[...] = (jnp.sum(h2 * w2_ref[...], axis=1, keepdims=True)
                        + u1x + b2_ref[...])                       # (TB, 1)
        boxmax_sc[...] = jnp.full_like(boxmax_sc, -jnp.inf)

    # --- Running box row-max over this column tile. ---------------------------
    boxmax_sc[...] = jnp.maximum(boxmax_sc[...],
                                 jnp.max(box, axis=1, keepdims=True))

    # --- Finalize: out = max(icnn, box_max).  (TB, 1) store -> HBM writeback is
    # 4 B/row instead of 512 B/row; the few masked stores at finalize are
    # negligible next to the trunk matmuls. ------------------------------------
    @pl.when(j == pl.num_programs(1) - 1)
    def _():
        o_ref[...] = jnp.maximum(icnn_sc[...], boxmax_sc[...])


def prepare_params(params, layer_widths, *, col_tile=1024):
    """One-time parameter prep (NOT per forward call):
      * transpose to (in, out), zero-pad to multiples of 128,
      * cast MXU operands to bf16 (accumulation stays f32),
      * pack u1 (the x @ U1.T skip of the final 1-wide layer) as column 0 of
        the box matrix L so it rides an MXU pass that already runs.
    NOTE: the -inf padding lives in lb (additive) on purpose; do NOT move it
    into L (multiplicative) -- 0 * -inf would produce NaN."""
    D, H1, H2, OUT = layer_widths
    assert OUT == 1
    Dp, H1p, H2p = _round_up(D, 128), _round_up(H1, 128), _round_up(H2, 128)
    n_box = 2 * D
    n_cols = 1 + n_box                                  # [u1 | L columns]
    TN = min(_round_up(col_tile, 128), _round_up(n_cols, 128))
    Lp = _round_up(n_cols, TN)

    def pad2(a, shape, dtype):
        out = jnp.zeros(shape, dtype)
        return out.at[: a.shape[0], : a.shape[1]].set(a.astype(dtype))

    l_packed = jnp.zeros((Dp, Lp), jnp.bfloat16)
    l_packed = l_packed.at[:D, 0].set(params["u1"][0].astype(jnp.bfloat16))
    l_packed = l_packed.at[:D, 1:n_cols].set(params["l"].T.astype(jnp.bfloat16))
    lb = (jnp.full((1, Lp), -jnp.inf, jnp.float32)      # -inf: padded + u1 cols
          .at[0, 1:n_cols].set(params["lb"].astype(jnp.float32)))

    arrs = dict(
        w0=pad2(params["w0"].T, (Dp, H1p), jnp.bfloat16),
        b0=pad2(params["b0"][None, :], (1, H1p), jnp.float32),
        w1=pad2(params["w1"].T, (H1p, H2p), jnp.bfloat16),
        b1=pad2(params["b1"][None, :], (1, H2p), jnp.float32),
        u0=pad2(params["u0"].T, (Dp, H2p), jnp.bfloat16),
        w2=pad2(params["w2"], (1, H2p), jnp.float32),   # (1, H2) row, VPU path
        b2=params["b2"].reshape(1, 1).astype(jnp.float32),
        l=l_packed, lb=lb,
    )
    meta = dict(D=D, Dp=Dp, H1p=H1p, H2p=H2p, Lp=Lp, TN=TN)
    return arrs, meta


def _vmem_bytes(TB, TN, NC, Dp, H1p, H2p, x_itemsize, single_weights):
    """Conservative VMEM footprint estimate, including trunk intermediates."""
    wbuf = 1 if single_weights else 2
    lbuf = 1 if (single_weights and NC == 1) else 2
    weights = 2 * (Dp * H1p + H1p * H2p + Dp * H2p) * wbuf   # bf16 matrices
    rows = 4 * 8 * (H1p + 2 * H2p + 128) * wbuf              # f32 bias/head rows
    l_tile = (2 * Dp * TN + 4 * 8 * TN) * lbuf               # L tile + lb
    x_tile = 2 * TB * Dp * x_itemsize                        # x tile (2 bufs)
    out_tile = 2 * TB * 128 * 4                              # (TB,1) out, padded
    scratch = 2 * TB * 128 * 4                               # icnn + boxmax
    interm = 4 * TB * (H1p + H2p + 2 * TN) + 2 * TB * Dp     # h1,h2,xl,box,xb
    return weights + rows + l_tile + x_tile + out_tile + scratch + interm


def icnn_approx_max_forward(x_in, arrs, meta, *, batch_tile=256,
                            single_buffer_weights=True):
    """Fused ICNNApproxMax forward (maximum_function='max'). Returns (B,) f32."""
    B = x_in.shape[0]
    D, Dp, Lp = meta["D"], meta["Dp"], meta["Lp"]
    H1p, H2p = meta["H1p"], meta["H2p"]

    # --- VMEM capacity per TensorCore (v5e/v6e 128 MiB, v7x 64 MiB). ----------
    try:
        vmem_cap = int(pltpu.get_tpu_info().vmem_capacity_bytes)
    except Exception:
        vmem_cap = 64 * 1024 * 1024          # conservative (v7x-safe) fallback
    vmem_budget = vmem_cap - 8 * 1024 * 1024

    # --- Batch tiling: always a multiple of 8 (Mosaic); ideally 256 MXU rows. -
    TB = _round_up(max(8, min(batch_tile, _round_up(B, 8))), 8)
    # v7x has 2 TensorCores: make sure the "parallel" batch axis has >= 2 tiles
    # whenever each half still keeps >= 128 MXU rows (v5e/v6e are unaffected).
    if _round_up(B, TB) // TB < 2 and B >= 256:
        TB = _round_up((B + 1) // 2, 8)
    B_pad = _round_up(B, TB)
    NB = B_pad // TB

    # --- x: skip the per-call padded/cast copy whenever shapes are aligned;
    # the kernel casts to bf16 on the fly. -------------------------------------
    x = x_in.reshape(B, -1)
    assert x.shape[1] == D, "flattened feature dim != layer_widths[0]"
    if B_pad == B and Dp == D:
        xp = x                               # zero-copy fast path
    else:
        # TODO(synk): keep activations pre-flattened / pre-padded upstream to
        # drop this extra read+write pass entirely.
        xp = jnp.zeros((B_pad, Dp), jnp.bfloat16).at[:B, :D].set(
            x.astype(jnp.bfloat16))
    x_itemsize = jnp.dtype(xp.dtype).itemsize

    # --- Box-matrix residency: keep all of L in VMEM (fetched once per kernel)
    # whenever it fits; otherwise stream column tiles (L is then re-fetched per
    # batch tile -- only hit for very large D). --------------------------------
    if _vmem_bytes(TB, Lp, 1, Dp, H1p, H2p, x_itemsize,
                   single_buffer_weights) <= vmem_budget:
        TN, NC = Lp, 1
    else:
        TN = meta["TN"]
        NC = Lp // TN
    est = _vmem_bytes(TB, TN, NC, Dp, H1p, H2p, x_itemsize,
                      single_buffer_weights)
    vmem_limit = int(min(vmem_budget, max(int(est * 1.5), 32 * 1024 * 1024)))

    res = lambda i, j: (0, 0)
    wspec = lambda shape: _spec(shape, res, single_buffer=single_buffer_weights)
    l_single = single_buffer_weights and NC == 1

    grid_spec = pltpu.PrefetchScalarGridSpec(
        num_scalar_prefetch=0,
        grid=(NB, NC),
        in_specs=[
            pl.BlockSpec((TB, Dp), lambda i, j: (i, 0)),     # x: batch-streamed
            wspec((Dp, H1p)),                                # W0 (resident)
            wspec((1, H1p)),                                 # b0
            wspec((H1p, H2p)),                               # W1
            wspec((1, H2p)),                                 # b1
            wspec((Dp, H2p)),                                # U0
            wspec((1, H2p)),                                 # W2 row
            wspec((1, 1)),                                   # b2
            _spec((Dp, TN), lambda i, j: (0, j), single_buffer=l_single),  # L
            _spec((1, TN), lambda i, j: (0, j), single_buffer=l_single),   # lb
        ],
        out_specs=pl.BlockSpec((TB, 1), lambda i, j: (i, 0)),
        scratch_shapes=[pltpu.VMEM((TB, 1), jnp.float32),    # icnn head
                        pltpu.VMEM((TB, 1), jnp.float32)],   # running box max
    )

    out = pl.pallas_call(
        _icnn_approx_max_kernel,
        out_shape=jax.ShapeDtypeStruct((B_pad, 1), jnp.float32),
        grid_spec=grid_spec,
        compiler_params=pltpu.CompilerParams(
            dimension_semantics=("parallel", "arbitrary"),
            vmem_limit_bytes=vmem_limit),
    )(xp, arrs["w0"], arrs["b0"], arrs["w1"], arrs["b1"], arrs["u0"],
      arrs["w2"], arrs["b2"], arrs["l"], arrs["lb"])

    return out[:B, 0]


def init_params(key, layer_widths):
    """Deterministic init mimicking torch nn.Linear (U(-1/sqrt(fan_in), ..))."""
    D, H1, H2, OUT = layer_widths
    assert OUT == 1

    def lin(key, fan_in, fan_out, bias=True):
        kw, kb = jax.random.split(key)
        bound = 1.0 / jnp.sqrt(fan_in)
        w = jax.random.uniform(kw, (fan_out, fan_in), jnp.float32, -bound, bound)
        if bias:
            b = jax.random.uniform(kb, (fan_out,), jnp.float32, -bound, bound)
            return w, b
        return w, None

    keys = jax.random.split(key, 6)
    w0, b0 = lin(keys[0], D, H1)              # ws[0]
    w1, b1 = lin(keys[1], H1, H2)             # ws[1]
    u0, _ = lin(keys[2], D, H2, bias=False)   # us[0]
    w2, b2 = lin(keys[3], H2, OUT)            # ws[-1]
    u1, _ = lin(keys[4], D, OUT, bias=False)  # us[-1]
    l_, lb = lin(keys[5], D, 2 * D)           # ls[0]
    return {"w0": w0, "b0": b0, "w1": w1, "b1": b1, "u0": u0,
            "w2": w2, "b2": b2, "u1": u1, "l": l_, "lb": lb}


def _reference_forward(x_nchw, p):
    """Pure-JAX f32 reference matching the PyTorch forward."""
    B = x_nchw.shape[0]
    x = x_nchw.reshape(B, -1).astype(jnp.float32)
    x1 = jax.nn.relu(x @ p["w0"].T + p["b0"])
    x1 = jax.nn.relu(x1 @ p["w1"].T + p["b1"] + x @ p["u0"].T)
    icnn = x1 @ p["w2"].T + p["b2"] + x @ p["u1"].T
    box = x @ p["l"].T + p["lb"]
    box_max = jnp.max(box, axis=1, keepdims=True)
    x_in = jnp.concatenate([icnn, box_max], axis=1)
    return jnp.max(x_in, axis=1)


if __name__ == "__main__":
    key = jax.random.PRNGKey(0)
    k_x, k_p = jax.random.split(key)

    # Small shapes: input NCHW (2, 4, 2, 2) -> D = 16; layer_widths = [16, 32, 32, 1]
    B, C, H, W = 2, 4, 2, 2
    D = C * H * W
    layer_widths = [D, 32, 32, 1]

    x = jax.random.normal(k_x, (B, C, H, W), jnp.float32)
    params = init_params(k_p, layer_widths)

    # One-time prep (transpose / pad / bf16 cast / u1 packing), then jit'd fwd.
    arrs, meta = prepare_params(params, layer_widths)

    def run(single_buffer):
        fwd = jax.jit(lambda xb: icnn_approx_max_forward(
            xb, arrs, meta, single_buffer_weights=single_buffer))
        return jax.block_until_ready(fwd(x))

    try:
        out = run(True)
    except Exception:
        # pipeline_mode=pl.Buffered(1) not supported by this jax/libtpu combo:
        # retry with default double buffering (identical math).
        out = run(False)

    ref = _reference_forward(x, params)

    assert out.shape == (B,)
    # bf16 matmul operands (f32 accumulation) -> loosened tolerance vs f32 ref.
    assert jnp.allclose(out, ref, atol=5e-2, rtol=5e-2), (out, ref)
    print("KERNEL_OK")
</pallas_src>

<mosaic_0001>
module attributes {stable_mosaic.version = 11 : i64} {
  func.func @_icnn_approx_max_kernel(%arg0: i32, %arg1: i32, %arg2: memref<8x128xbf16, #tpu.memory_space<vmem>>, %arg3: memref<128x128xbf16, #tpu.memory_space<vmem>>, %arg4: memref<1x128xf32, #tpu.memory_space<vmem>>, %arg5: memref<128x128xbf16, #tpu.memory_space<vmem>>, %arg6: memref<1x128xf32, #tpu.memory_space<vmem>>, %arg7: memref<128x128xbf16, #tpu.memory_space<vmem>>, %arg8: memref<1x128xf32, #tpu.memory_space<vmem>>, %arg9: memref<1x1xf32, #tpu.memory_space<vmem>>, %arg10: memref<128x128xbf16, #tpu.memory_space<vmem>>, %arg11: memref<1x128xf32, #tpu.memory_space<vmem>>, %arg12: memref<8x1xf32, #tpu.memory_space<vmem>>, %arg13: memref<8x1xf32, #tpu.memory_space<vmem>>, %arg14: memref<8x1xf32, #tpu.memory_space<vmem>>) attributes {dimension_semantics = [#tpu.dimension_semantics<parallel>, #tpu.dimension_semantics<arbitrary>], iteration_bounds = array<i64: 1, 1>, scalar_prefetch = 0 : i64, scratch_operands = 2 : i64, tpu.core_type = #tpu.core_type<tc>, window_params = [{transform_indices = @transform_0, window_bounds = array<i64: 8, 128>}, {pipeline_mode = #tpu.pipeline_mode<synchronous>, transform_indices = @transform_1, window_bounds = array<i64: 128, 128>}, {pipeline_mode = #tpu.pipeline_mode<synchronous>, transform_indices = @transform_2, window_bounds = array<i64: 1, 128>}, {pipeline_mode = #tpu.pipeline_mode<synchronous>, transform_indices = @transform_3, window_bounds = array<i64: 128, 128>}, {pipeline_mode = #tpu.pipeline_mode<synchronous>, transform_indices = @transform_4, window_bounds = array<i64: 1, 128>}, {pipeline_mode = #tpu.pipeline_mode<synchronous>, transform_indices = @transform_5, window_bounds = array<i64: 128, 128>}, {pipeline_mode = #tpu.pipeline_mode<synchronous>, transform_indices = @transform_6, window_bounds = array<i64: 1, 128>}, {pipeline_mode = #tpu.pipeline_mode<synchronous>, transform_indices = @transform_7, window_bounds = array<i64: 1, 1>}, {pipeline_mode = #tpu.pipeline_mode<synchronous>, transform_indices = @transform_8, window_bounds = array<i64: 128, 128>}, {pipeline_mode = #tpu.pipeline_mode<synchronous>, transform_indices = @transform_9, window_bounds = array<i64: 1, 128>}, {transform_indices = @transform_10, window_bounds = array<i64: 8, 1>}]} {
    %c0 = arith.constant 0 : index
    %c0_0 = arith.constant 0 : index
    %0 = vector.load %arg2[%c0, %c0_0] : memref<8x128xbf16, #tpu.memory_space<vmem>>, vector<8x128xbf16>
    %c0_1 = arith.constant 0 : index
    %c0_2 = arith.constant 0 : index
    %1 = vector.load %arg10[%c0_1, %c0_2] : memref<128x128xbf16, #tpu.memory_space<vmem>>, vector<128x128xbf16>
    %cst = arith.constant dense<0.000000e+00> : vector<8x128xf32>
    %2 = tpu.matmul %0, %1, %cst {dimension_numbers = #tpu.dot_dimension_numbers<[1], [0], [0], [1], [0, 0, 1, 1], [], []>} : vector<8x128xbf16>, vector<128x128xbf16>, vector<8x128xf32> -> vector<8x128xf32>
    %c0_3 = arith.constant 0 : index
    %c0_4 = arith.constant 0 : index
    %3 = vector.load %arg11[%c0_3, %c0_4] : memref<1x128xf32, #tpu.memory_space<vmem>>, vector<1x128xf32>
    %4 = vector.broadcast %3 : vector<1x128xf32> to vector<8x128xf32>
    %5 = arith.addf %2, %4 : vector<8x128xf32>
    %c0_i32 = arith.constant 0 : i32
    %6 = arith.cmpi eq, %arg1, %c0_i32 : i32
    %7 = arith.extui %6 : i1 to i32
    %c0_i32_5 = arith.constant 0 : i32
    %8 = arith.cmpi ne, %7, %c0_i32_5 : i32
    scf.if %8 {
      %c0_13 = arith.constant 0 : index
      %c0_14 = arith.constant 0 : index
      %17 = vector.load %arg3[%c0_13, %c0_14] : memref<128x128xbf16, #tpu.memory_space<vmem>>, vector<128x128xbf16>
      %cst_15 = arith.constant dense<0.000000e+00> : vector<8x128xf32>
      %18 = tpu.matmul %0, %17, %cst_15 {dimension_numbers = #tpu.dot_dimension_numbers<[1], [0], [0], [1], [0, 0, 1, 1], [], []>} : vector<8x128xbf16>, vector<128x128xbf16>, vector<8x128xf32> -> vector<8x128xf32>
      %c0_16 = arith.constant 0 : index
      %c0_17 = arith.constant 0 : index
      %19 = vector.load %arg4[%c0_16, %c0_17] : memref<1x128xf32, #tpu.memory_space<vmem>>, vector<1x128xf32>
      %20 = vector.broadcast %19 : vector<1x128xf32> to vector<8x128xf32>
      %21 = arith.addf %18, %20 : vector<8x128xf32>
      %cst_18 = arith.constant 0.000000e+00 : f32
      %22 = vector.broadcast %cst_18 : f32 to vector<8x128xf32>
      %23 = arith.maximumf %21, %22 : vector<8x128xf32>
      %24 = arith.truncf %23 : vector<8x128xf32> to vector<8x128xbf16>
      %c0_19 = arith.constant 0 : index
      %c0_20 = arith.constant 0 : index
      %25 = vector.load %arg5[%c0_19, %c0_20] : memref<128x128xbf16, #tpu.memory_space<vmem>>, vector<128x128xbf16>
      %cst_21 = arith.constant dense<0.000000e+00> : vector<8x128xf32>
      %26 = tpu.matmul %24, %25, %cst_21 {dimension_numbers = #tpu.dot_dimension_numbers<[1], [0], [0], [1], [0, 0, 1, 1], [], []>} : vector<8x128xbf16>, vector<128x128xbf16>, vector<8x128xf32> -> vector<8x128xf32>
      %c0_22 = arith.constant 0 : index
      %c0_23 = arith.constant 0 : index
      %27 = vector.load %arg6[%c0_22, %c0_23] : memref<1x128xf32, #tpu.memory_space<vmem>>, vector<1x128xf32>
      %28 = vector.broadcast %27 : vector<1x128xf32> to vector<8x128xf32>
      %29 = arith.addf %26, %28 : vector<8x128xf32>
      %c0_24 = arith.constant 0 : index
      %c0_25 = arith.constant 0 : index
      %30 = vector.load %arg7[%c0_24, %c0_25] : memref<128x128xbf16, #tpu.memory_space<vmem>>, vector<128x128xbf16>
      %cst_26 = arith.constant dense<0.000000e+00> : vector<8x128xf32>
      %31 = tpu.matmul %0, %30, %cst_26 {dimension_numbers = #tpu.dot_dimension_numbers<[1], [0], [0], [1], [0, 0, 1, 1], [], []>} : vector<8x128xbf16>, vector<128x128xbf16>, vector<8x128xf32> -> vector<8x128xf32>
      %32 = arith.addf %29, %31 : vector<8x128xf32>
      %cst_27 = arith.constant 0.000000e+00 : f32
      %33 = vector.broadcast %cst_27 : f32 to vector<8x128xf32>
      %34 = arith.maximumf %32, %33 : vector<8x128xf32>
      %35 = tpu.iota {dimensions = array<i32: 1>} : vector<8x128xi32>
      %c0_i32_28 = arith.constant 0 : i32
      %36 = vector.broadcast %c0_i32_28 : i32 to vector<8x128xi32>
      %37 = arith.cmpi eq, %35, %36 : vector<8x128xi32>
      %cst_29 = arith.constant 0.000000e+00 : f32
      %38 = vector.broadcast %cst_29 : f32 to vector<8x128xf32>
      %39 = arith.select %37, %2, %38 : vector<8x128xi1>, vector<8x128xf32>
      %cst_30 = arith.constant dense<0.000000e+00> : vector<8xf32>
      %40 = vector.multi_reduction <add>, %39, %cst_30 [1] : vector<8x128xf32> to vector<8xf32>
      %41 = vector.shape_cast %40 : vector<8xf32> to vector<8x1xf32>
      %c0_31 = arith.constant 0 : index
      %c0_32 = arith.constant 0 : index
      %42 = vector.load %arg8[%c0_31, %c0_32] : memref<1x128xf32, #tpu.memory_space<vmem>>, vector<1x128xf32>
      %43 = vector.broadcast %42 : vector<1x128xf32> to vector<8x128xf32>
      %44 = arith.mulf %34, %43 : vector<8x128xf32>
      %cst_33 = arith.constant dense<0.000000e+00> : vector<8xf32>
      %45 = vector.multi_reduction <add>, %44, %cst_33 [1] : vector<8x128xf32> to vector<8xf32>
      %46 = vector.shape_cast %45 : vector<8xf32> to vector<8x1xf32>
      %47 = arith.addf %46, %41 : vector<8x1xf32>
      %c0_34 = arith.constant 0 : index
      %c0_35 = arith.constant 0 : index
      %48 = vector.load %arg9[%c0_34, %c0_35] : memref<1x1xf32, #tpu.memory_space<vmem>>, vector<1x1xf32>
      %49 = vector.broadcast %48 : vector<1x1xf32> to vector<8x1xf32>
      %50 = arith.addf %47, %49 : vector<8x1xf32>
      %c0_36 = arith.constant 0 : index
      %c0_37 = arith.constant 0 : index
      %51 = vector.load %arg13[%c0_36, %c0_37] : memref<8x1xf32, #tpu.memory_space<vmem>>, vector<8x1xf32>
      tpu.vector_store %arg13[%c0_36, %c0_37], %50 {strides = array<i32>} : memref<8x1xf32, #tpu.memory_space<vmem>>, vector<8x1xf32>,
      %cst_38 = arith.constant 0xFF800000 : f32
      %52 = vector.broadcast %cst_38 : f32 to vector<8x1xf32>
      %c0_39 = arith.constant 0 : index
      %c0_40 = arith.constant 0 : index
      %53 = vector.load %arg14[%c0_39, %c0_40] : memref<8x1xf32, #tpu.memory_space<vmem>>, vector<8x1xf32>
      tpu.vector_store %arg14[%c0_39, %c0_40], %52 {strides = array<i32>} : memref<8x1xf32, #tpu.memory_space<vmem>>, vector<8x1xf32>,
    } else {
    }
    %c0_6 = arith.constant 0 : index
    %c0_7 = arith.constant 0 : index
    %9 = vector.load %arg14[%c0_6, %c0_7] : memref<8x1xf32, #tpu.memory_space<vmem>>, vector<8x1xf32>
    %cst_8 = arith.constant dense<0xFF800000> : vector<8xf32>
    %10 = vector.multi_reduction <maximumf>, %5, %cst_8 [1] : vector<8x128xf32> to vector<8xf32>
    %11 = vector.shape_cast %10 : vector<8xf32> to vector<8x1xf32>
    %12 = arith.maximumf %9, %11 : vector<8x1xf32>
    %c0_9 = arith.constant 0 : index
    %c0_10 = arith.constant 0 : index
    %13 = vector.load %arg14[%c0_9, %c0_10] : memref<8x1xf32, #tpu.memory_space<vmem>>, vector<8x1xf32>
    tpu.vector_store %arg14[%c0_9, %c0_10], %12 {strides = array<i32>} : memref<8x1xf32, #tpu.memory_space<vmem>>, vector<8x1xf32>,
    %c0_i32_11 = arith.constant 0 : i32
    %14 = arith.cmpi eq, %arg1, %c0_i32_11 : i32
    %15 = arith.extui %14 : i1 to i32
    %c0_i32_12 = arith.constant 0 : i32
    %16 = arith.cmpi ne, %15, %c0_i32_12 : i32
    scf.if %16 {
      %c0_13 = arith.constant 0 : index
      %c0_14 = arith.constant 0 : index
      %17 = vector.load %arg13[%c0_13, %c0_14] : memref<8x1xf32, #tpu.memory_space<vmem>>, vector<8x1xf32>
      %c0_15 = arith.constant 0 : index
      %c0_16 = arith.constant 0 : index
      %18 = vector.load %arg14[%c0_15, %c0_16] : memref<8x1xf32, #tpu.memory_space<vmem>>, vector<8x1xf32>
      %19 = arith.maximumf %17, %18 : vector<8x1xf32>
      %c0_17 = arith.constant 0 : index
      %c0_18 = arith.constant 0 : index
      %20 = vector.load %arg12[%c0_17, %c0_18] : memref<8x1xf32, #tpu.memory_space<vmem>>, vector<8x1xf32>
      tpu.vector_store %arg12[%c0_17, %c0_18], %19 {strides = array<i32>} : memref<8x1xf32, #tpu.memory_space<vmem>>, vector<8x1xf32>,
    } else {
    }
    return
  }
  func.func @transform_0(%arg0: i32, %arg1: i32) -> (i32, i32) {
    %c0_i32 = arith.constant 0 : i32
    %c0_i32_0 = arith.constant 0 : i32
    return %arg0, %c0_i32 : i32, i32
  }
  func.func @transform_1(%arg0: i32, %arg1: i32) -> (i32, i32) {
    %c0_i32 = arith.constant 0 : i32
    %c0_i32_0 = arith.constant 0 : i32
    %c0_i32_1 = arith.constant 0 : i32
    return %c0_i32, %c0_i32_0 : i32, i32
  }
  func.func @transform_2(%arg0: i32, %arg1: i32) -> (i32, i32) {
    %c0_i32 = arith.constant 0 : i32
    %c0_i32_0 = arith.constant 0 : i32
    %c0_i32_1 = arith.constant 0 : i32
    return %c0_i32, %c0_i32_0 : i32, i32
  }
  func.func @transform_3(%arg0: i32, %arg1: i32) -> (i32, i32) {
    %c0_i32 = arith.constant 0 : i32
    %c0_i32_0 = arith.constant 0 : i32
    %c0_i32_1 = arith.constant 0 : i32
    return %c0_i32, %c0_i32_0 : i32, i32
  }
  func.func @transform_4(%arg0: i32, %arg1: i32) -> (i32, i32) {
    %c0_i32 = arith.constant 0 : i32
    %c0_i32_0 = arith.constant 0 : i32
    %c0_i32_1 = arith.constant 0 : i32
    return %c0_i32, %c0_i32_0 : i32, i32
  }
  func.func @transform_5(%arg0: i32, %arg1: i32) -> (i32, i32) {
    %c0_i32 = arith.constant 0 : i32
    %c0_i32_0 = arith.constant 0 : i32
    %c0_i32_1 = arith.constant 0 : i32
    return %c0_i32, %c0_i32_0 : i32, i32
  }
  func.func @transform_6(%arg0: i32, %arg1: i32) -> (i32, i32) {
    %c0_i32 = arith.constant 0 : i32
    %c0_i32_0 = arith.constant 0 : i32
    %c0_i32_1 = arith.constant 0 : i32
    return %c0_i32, %c0_i32_0 : i32, i32
  }
  func.func @transform_7(%arg0: i32, %arg1: i32) -> (i32, i32) {
    %c0_i32 = arith.constant 0 : i32
    %c0_i32_0 = arith.constant 0 : i32
    %c0_i32_1 = arith.constant 0 : i32
    return %c0_i32, %c0_i32_0 : i32, i32
  }
  func.func @transform_8(%arg0: i32, %arg1: i32) -> (i32, i32) {
    %c0_i32 = arith.constant 0 : i32
    %c0_i32_0 = arith.constant 0 : i32
    return %c0_i32, %arg1 : i32, i32
  }
  func.func @transform_9(%arg0: i32, %arg1: i32) -> (i32, i32) {
    %c0_i32 = arith.constant 0 : i32
    %c0_i32_0 = arith.constant 0 : i32
    return %c0_i32, %arg1 : i32, i32
  }
  func.func @transform_10(%arg0: i32, %arg1: i32) -> (i32, i32) {
    %c0_i32 = arith.constant 0 : i32
    %c0_i32_0 = arith.constant 0 : i32
    return %arg0, %c0_i32 : i32, i32
  }
}

module attributes {stable_mosaic.version = 11 : i64} {
  func.func @_icnn_approx_max_kernel(%arg0: i32, %arg1: i32, %arg2: memref<8x128xbf16, #tpu.memory_space<vmem>>, %arg3: memref<128x128xbf16, #tpu.memory_space<vmem>>, %arg4: memref<1x128xf32, #tpu.memory_space<vmem>>, %arg5: memref<128x128xbf16, #tpu.memory_space<vmem>>, %arg6: memref<1x128xf32, #tpu.memory_space<vmem>>, %arg7: memref<128x128xbf16, #tpu.memory_space<vmem>>, %arg8: memref<1x128xf32, #tpu.memory_space<vmem>>, %arg9: memref<1x1xf32, #tpu.memory_space<vmem>>, %arg10: memref<128x128xbf16, #tpu.memory_space<vmem>>, %arg11: memref<1x128xf32, #tpu.memory_space<vmem>>, %arg12: memref<8x1xf32, #tpu.memory_space<vmem>>, %arg13: memref<8x1xf32, #tpu.memory_space<vmem>>, %arg14: memref<8x1xf32, #tpu.memory_space<vmem>>) attributes {dimension_semantics = [#tpu.dimension_semantics<parallel>, #tpu.dimension_semantics<arbitrary>], iteration_bounds = array<i64: 1, 1>, scalar_prefetch = 0 : i64, scratch_operands = 2 : i64, tpu.core_type = #tpu.core_type<tc>, window_params = [{transform_indices = @transform_0, window_bounds = array<i64: 8, 128>}, {pipeline_mode = #tpu.pipeline_mode<synchronous>, transform_indices = @transform_1, window_bounds = array<i64: 128, 128>}, {pipeline_mode = #tpu.pipeline_mode<synchronous>, transform_indices = @transform_2, window_bounds = array<i64: 1, 128>}, {pipeline_mode = #tpu.pipeline_mode<synchronous>, transform_indices = @transform_3, window_bounds = array<i64: 128, 128>}, {pipeline_mode = #tpu.pipeline_mode<synchronous>, transform_indices = @transform_4, window_bounds = array<i64: 1, 128>}, {pipeline_mode = #tpu.pipeline_mode<synchronous>, transform_indices = @transform_5, window_bounds = array<i64: 128, 128>}, {pipeline_mode = #tpu.pipeline_mode<synchronous>, transform_indices = @transform_6, window_bounds = array<i64: 1, 128>}, {pipeline_mode = #tpu.pipeline_mode<synchronous>, transform_indices = @transform_7, window_bounds = array<i64: 1, 1>}, {transform_indices = @transform_8, window_bounds = array<i64: 128, 128>}, {transform_indices = @transform_9, window_bounds = array<i64: 1, 128>}, {transform_indices = @transform_10, window_bounds = array<i64: 8, 1>}]} {
    %c0 = arith.constant 0 : index
    %c0_0 = arith.constant 0 : index
    %0 = vector.load %arg2[%c0, %c0_0] : memref<8x128xbf16, #tpu.memory_space<vmem>>, vector<8x128xbf16>
    %c0_1 = arith.constant 0 : index
    %c0_2 = arith.constant 0 : index
    %1 = vector.load %arg10[%c0_1, %c0_2] : memref<128x128xbf16, #tpu.memory_space<vmem>>, vector<128x128xbf16>
    %cst = arith.constant dense<0.000000e+00> : vector<8x128xf32>
    %2 = tpu.matmul %0, %1, %cst {dimension_numbers = #tpu.dot_dimension_numbers<[1], [0], [0], [1], [0, 0, 1, 1], [], []>} : vector<8x128xbf16>, vector<128x128xbf16>, vector<8x128xf32> -> vector<8x128xf32>
    %c0_3 = arith.constant 0 : index
    %c0_4 = arith.constant 0 : index
    %3 = vector.load %arg11[%c0_3, %c0_4] : memref<1x128xf32, #tpu.memory_space<vmem>>, vector<1x128xf32>
    %4 = vector.broadcast %3 : vector<1x128xf32> to vector<8x128xf32>
    %5 = arith.addf %2, %4 : vector<8x128xf32>
    %c0_i32 = arith.constant 0 : i32
    %6 = arith.cmpi eq, %arg1, %c0_i32 : i32
    %7 = arith.extui %6 : i1 to i32
    %c0_i32_5 = arith.constant 0 : i32
    %8 = arith.cmpi ne, %7, %c0_i32_5 : i32
    scf.if %8 {
      %c0_13 = arith.constant 0 : index
      %c0_14 = arith.constant 0 : index
      %17 = vector.load %arg3[%c0_13, %c0_14] : memref<128x128xbf16, #tpu.memory_space<vmem>>, vector<128x128xbf16>
      %cst_15 = arith.constant dense<0.000000e+00> : vector<8x128xf32>
      %18 = tpu.matmul %0, %17, %cst_15 {dimension_numbers = #tpu.dot_dimension_numbers<[1], [0], [0], [1], [0, 0, 1, 1], [], []>} : vector<8x128xbf16>, vector<128x128xbf16>, vector<8x128xf32> -> vector<8x128xf32>
      %c0_16 = arith.constant 0 : index
      %c0_17 = arith.constant 0 : index
      %19 = vector.load %arg4[%c0_16, %c0_17] : memref<1x128xf32, #tpu.memory_space<vmem>>, vector<1x128xf32>
      %20 = vector.broadcast %19 : vector<1x128xf32> to vector<8x128xf32>
      %21 = arith.addf %18, %20 : vector<8x128xf32>
      %cst_18 = arith.constant 0.000000e+00 : f32
      %22 = vector.broadcast %cst_18 : f32 to vector<8x128xf32>
      %23 = arith.maximumf %21, %22 : vector<8x128xf32>
      %24 = arith.truncf %23 : vector<8x128xf32> to vector<8x128xbf16>
      %c0_19 = arith.constant 0 : index
      %c0_20 = arith.constant 0 : index
      %25 = vector.load %arg5[%c0_19, %c0_20] : memref<128x128xbf16, #tpu.memory_space<vmem>>, vector<128x128xbf16>
      %cst_21 = arith.constant dense<0.000000e+00> : vector<8x128xf32>
      %26 = tpu.matmul %24, %25, %cst_21 {dimension_numbers = #tpu.dot_dimension_numbers<[1], [0], [0], [1], [0, 0, 1, 1], [], []>} : vector<8x128xbf16>, vector<128x128xbf16>, vector<8x128xf32> -> vector<8x128xf32>
      %c0_22 = arith.constant 0 : index
      %c0_23 = arith.constant 0 : index
      %27 = vector.load %arg6[%c0_22, %c0_23] : memref<1x128xf32, #tpu.memory_space<vmem>>, vector<1x128xf32>
      %28 = vector.broadcast %27 : vector<1x128xf32> to vector<8x128xf32>
      %29 = arith.addf %26, %28 : vector<8x128xf32>
      %c0_24 = arith.constant 0 : index
      %c0_25 = arith.constant 0 : index
      %30 = vector.load %arg7[%c0_24, %c0_25] : memref<128x128xbf16, #tpu.memory_space<vmem>>, vector<128x128xbf16>
      %cst_26 = arith.constant dense<0.000000e+00> : vector<8x128xf32>
      %31 = tpu.matmul %0, %30, %cst_26 {dimension_numbers = #tpu.dot_dimension_numbers<[1], [0], [0], [1], [0, 0, 1, 1], [], []>} : vector<8x128xbf16>, vector<128x128xbf16>, vector<8x128xf32> -> vector<8x128xf32>
      %32 = arith.addf %29, %31 : vector<8x128xf32>
      %cst_27 = arith.constant 0.000000e+00 : f32
      %33 = vector.broadcast %cst_27 : f32 to vector<8x128xf32>
      %34 = arith.maximumf %32, %33 : vector<8x128xf32>
      %35 = tpu.iota {dimensions = array<i32: 1>} : vector<8x128xi32>
      %c0_i32_28 = arith.constant 0 : i32
      %36 = vector.broadcast %c0_i32_28 : i32 to vector<8x128xi32>
      %37 = arith.cmpi eq, %35, %36 : vector<8x128xi32>
      %cst_29 = arith.constant 0.000000e+00 : f32
      %38 = vector.broadcast %cst_29 : f32 to vector<8x128xf32>
      %39 = arith.select %37, %2, %38 : vector<8x128xi1>, vector<8x128xf32>
      %cst_30 = arith.constant dense<0.000000e+00> : vector<8xf32>
      %40 = vector.multi_reduction <add>, %39, %cst_30 [1] : vector<8x128xf32> to vector<8xf32>
      %41 = vector.shape_cast %40 : vector<8xf32> to vector<8x1xf32>
      %c0_31 = arith.constant 0 : index
      %c0_32 = arith.constant 0 : index
      %42 = vector.load %arg8[%c0_31, %c0_32] : memref<1x128xf32, #tpu.memory_space<vmem>>, vector<1x128xf32>
      %43 = vector.broadcast %42 : vector<1x128xf32> to vector<8x128xf32>
      %44 = arith.mulf %34, %43 : vector<8x128xf32>
      %cst_33 = arith.constant dense<0.000000e+00> : vector<8xf32>
      %45 = vector.multi_reduction <add>, %44, %cst_33 [1] : vector<8x128xf32> to vector<8xf32>
      %46 = vector.shape_cast %45 : vector<8xf32> to vector<8x1xf32>
      %47 = arith.addf %46, %41 : vector<8x1xf32>
      %c0_34 = arith.constant 0 : index
      %c0_35 = arith.constant 0 : index
      %48 = vector.load %arg9[%c0_34, %c0_35] : memref<1x1xf32, #tpu.memory_space<vmem>>, vector<1x1xf32>
      %49 = vector.broadcast %48 : vector<1x1xf32> to vector<8x1xf32>
      %50 = arith.addf %47, %49 : vector<8x1xf32>
      %c0_36 = arith.constant 0 : index
      %c0_37 = arith.constant 0 : index
      %51 = vector.load %arg13[%c0_36, %c0_37] : memref<8x1xf32, #tpu.memory_space<vmem>>, vector<8x1xf32>
      tpu.vector_store %arg13[%c0_36, %c0_37], %50 {strides = array<i32>} : memref<8x1xf32, #tpu.memory_space<vmem>>, vector<8x1xf32>,
      %cst_38 = arith.constant 0xFF800000 : f32
      %52 = vector.broadcast %cst_38 : f32 to vector<8x1xf32>
      %c0_39 = arith.constant 0 : index
      %c0_40 = arith.constant 0 : index
      %53 = vector.load %arg14[%c0_39, %c0_40] : memref<8x1xf32, #tpu.memory_space<vmem>>, vector<8x1xf32>
      tpu.vector_store %arg14[%c0_39, %c0_40], %52 {strides = array<i32>} : memref<8x1xf32, #tpu.memory_space<vmem>>, vector<8x1xf32>,
    } else {
    }
    %c0_6 = arith.constant 0 : index
    %c0_7 = arith.constant 0 : index
    %9 = vector.load %arg14[%c0_6, %c0_7] : memref<8x1xf32, #tpu.memory_space<vmem>>, vector<8x1xf32>
    %cst_8 = arith.constant dense<0xFF800000> : vector<8xf32>
    %10 = vector.multi_reduction <maximumf>, %5, %cst_8 [1] : vector<8x128xf32> to vector<8xf32>
    %11 = vector.shape_cast %10 : vector<8xf32> to vector<8x1xf32>
    %12 = arith.maximumf %9, %11 : vector<8x1xf32>
    %c0_9 = arith.constant 0 : index
    %c0_10 = arith.constant 0 : index
    %13 = vector.load %arg14[%c0_9, %c0_10] : memref<8x1xf32, #tpu.memory_space<vmem>>, vector<8x1xf32>
    tpu.vector_store %arg14[%c0_9, %c0_10], %12 {strides = array<i32>} : memref<8x1xf32, #tpu.memory_space<vmem>>, vector<8x1xf32>,
    %c0_i32_11 = arith.constant 0 : i32
    %14 = arith.cmpi eq, %arg1, %c0_i32_11 : i32
    %15 = arith.extui %14 : i1 to i32
    %c0_i32_12 = arith.constant 0 : i32
    %16 = arith.cmpi ne, %15, %c0_i32_12 : i32
    scf.if %16 {
      %c0_13 = arith.constant 0 : index
      %c0_14 = arith.constant 0 : index
      %17 = vector.load %arg13[%c0_13, %c0_14] : memref<8x1xf32, #tpu.memory_space<vmem>>, vector<8x1xf32>
      %c0_15 = arith.constant 0 : index
      %c0_16 = arith.constant 0 : index
      %18 = vector.load %arg14[%c0_15, %c0_16] : memref<8x1xf32, #tpu.memory_space<vmem>>, vector<8x1xf32>
      %19 = arith.maximumf %17, %18 : vector<8x1xf32>
      %c0_17 = arith.constant 0 : index
      %c0_18 = arith.constant 0 : index
      %20 = vector.load %arg12[%c0_17, %c0_18] : memref<8x1xf32, #tpu.memory_space<vmem>>, vector<8x1xf32>
      tpu.vector_store %arg12[%c0_17, %c0_18], %19 {strides = array<i32>} : memref<8x1xf32, #tpu.memory_space<vmem>>, vector<8x1xf32>,
    } else {
    }
    return
  }
  func.func @transform_0(%arg0: i32, %arg1: i32) -> (i32, i32) {
    %c0_i32 = arith.constant 0 : i32
    %c0_i32_0 = arith.constant 0 : i32
    return %arg0, %c0_i32 : i32, i32
  }
  func.func @transform_1(%arg0: i32, %arg1: i32) -> (i32, i32) {
    %c0_i32 = arith.constant 0 : i32
    %c0_i32_0 = arith.constant 0 : i32
    %c0_i32_1 = arith.constant 0 : i32
    return %c0_i32, %c0_i32_0 : i32, i32
  }
  func.func @transform_2(%arg0: i32, %arg1: i32) -> (i32, i32) {
    %c0_i32 = arith.constant 0 : i32
    %c0_i32_0 = arith.constant 0 : i32
    %c0_i32_1 = arith.constant 0 : i32
    return %c0_i32, %c0_i32_0 : i32, i32
  }
  func.func @transform_3(%arg0: i32, %arg1: i32) -> (i32, i32) {
    %c0_i32 = arith.constant 0 : i32
    %c0_i32_0 = arith.constant 0 : i32
    %c0_i32_1 = arith.constant 0 : i32
    return %c0_i32, %c0_i32_0 : i32, i32
  }
  func.func @transform_4(%arg0: i32, %arg1: i32) -> (i32, i32) {
    %c0_i32 = arith.constant 0 : i32
    %c0_i32_0 = arith.constant 0 : i32
    %c0_i32_1 = arith.constant 0 : i32
    return %c0_i32, %c0_i32_0 : i32, i32
  }
  func.func @transform_5(%arg0: i32, %arg1: i32) -> (i32, i32) {
    %c0_i32 = arith.constant 0 : i32
    %c0_i32_0 = arith.constant 0 : i32
    %c0_i32_1 = arith.constant 0 : i32
    return %c0_i32, %c0_i32_0 : i32, i32
  }
  func.func @transform_6(%arg0: i32, %arg1: i32) -> (i32, i32) {
    %c0_i32 = arith.constant 0 : i32
    %c0_i32_0 = arith.constant 0 : i32
    %c0_i32_1 = arith.constant 0 : i32
    return %c0_i32, %c0_i32_0 : i32, i32
  }
  func.func @transform_7(%arg0: i32, %arg1: i32) -> (i32, i32) {
    %c0_i32 = arith.constant 0 : i32
    %c0_i32_0 = arith.constant 0 : i32
    %c0_i32_1 = arith.constant 0 : i32
    return %c0_i32, %c0_i32_0 : i32, i32
  }
  func.func @transform_8(%arg0: i32, %arg1: i32) -> (i32, i32) {
    %c0_i32 = arith.constant 0 : i32
    %c0_i32_0 = arith.constant 0 : i32
    return %c0_i32, %arg1 : i32, i32
  }
  func.func @transform_9(%arg0: i32, %arg1: i32) -> (i32, i32) {
    %c0_i32 = arith.constant 0 : i32
    %c0_i32_0 = arith.constant 0 : i32
    return %c0_i32, %arg1 : i32, i32
  }
  func.func @transform_10(%arg0: i32, %arg1: i32) -> (i32, i32) {
    %c0_i32 = arith.constant 0 : i32
    %c0_i32_0 = arith.constant 0 : i32
    return %arg0, %c0_i32 : i32, i32
  }
}

</mosaic_0001>

<bundles_post_ra>
// kernel: _lambda_.1
= control target key start
LH: loop header
LB: loop body
LE: loop exit
PB: predicated region body
PF: predicated region fallthrough
CT: control target
= control target key end

     0   :  { %s845_s0 = inlined_call_operand.vmem [shape: bf16[8,128], index: 0, kind: input, shape index: {}]   ;;  %s846_s1 = inlined_call_operand.hbm [shape: bf16[128,128], index: 1, kind: input, shape index: {}]   ;;  %s847_s2 = inlined_call_operand.vmem [shape: f32[1,128], index: 2, kind: input, shape index: {}]   ;;  %s848_s3 = inlined_call_operand.hbm [shape: bf16[128,128], index: 3, kind: input, shape index: {}]   ;;  %s849_s4 = inlined_call_operand.vmem [shape: f32[1,128], index: 4, kind: input, shape index: {}]   ;;  %s850_s5 = inlined_call_operand.hbm [shape: bf16[128,128], index: 5, kind: input, shape index: {}]   ;;  %s851_s6 = inlined_call_operand.vmem [shape: f32[1,128], index: 6, kind: input, shape index: {}]   ;;  %s852_s7 = inlined_call_operand.<no memory space> [shape: f32[1,1], index: 7, kind: input, shape index: {}]   ;;  %s853_s8 = inlined_call_operand.hbm [shape: bf16[128,128], index: 8, kind: input, shape index: {}]   ;;  %s854_s9 = inlined_call_operand.vmem [shape: f32[1,128], index: 9, kind: input, shape index: {}]   ;;  %s855_s10 = inlined_call_operand.vmem [shape: f32[8,1], index: 10, kind: output, shape index: {}]  }
   0x1   :  { %v15_v0 = vstv %s852_s7 }
   0x2   :  { %16 = vst [vmem:[#allocation4] sm:$0x1] %v15_v0 }
   0x3   :  { %17 = vsyncpa [#allocation6], 0 }
   0x4   :  { %18 = vsyncpa [#allocation8], 0 }
   0x5   :  { %19 = vsyncpa [#allocation11], 0  ;;  %s41_s17 = sshll.u32 %s848_s3, 4  ;;  %s746_s18 = smov [#allocation7]   ;;  %s42_s17 = int_to_ptr.hbm [resolvable:$true] %s41_s17 }
   0x6   :  { %s43_s19 = sshll.u32 %s746_s18, 4  ;;  %s26_s22 = sshll.u32 %s846_s1, 4  ;;  %s44_s19 = int_to_ptr.vmem [resolvable:$true] %s43_s19  ;;  %s27_s22 = int_to_ptr.hbm [resolvable:$true] %s26_s22 }
   0x7   :  { %s747_s23 = smov 64   ;;  %s748_s24 = smov 4  }
   0x8   :  { %49 = dma.hbm_to_vmem [thread:$0]  %s42_s17, 1024, %s44_s19, [#allocation8], %s747_s23, %s747_s23, %s748_s24  }
   0x9   :  { %s749_s7 = smov [#allocation5]   ;;  %s56_s28 = sshll.u32 %s850_s5, 4  ;;  %s57_s28 = int_to_ptr.hbm [resolvable:$true] %s56_s28 }
   0xa   :  { %s28_s25 = sshll.u32 %s749_s7, 4  ;;  %s73_s30 = sshll.u32 %s853_s8, 4  ;;  %s29_s25 = int_to_ptr.vmem [resolvable:$true] %s28_s25  ;;  %s74_s30 = int_to_ptr.hbm [resolvable:$true] %s73_s30 }
   0xb   :  { %34 = dma.hbm_to_vmem [thread:$0]  %s27_s22, 1024, %s29_s25, [#allocation6], %s747_s23, %s747_s23, %s748_s24  }
   0xc   :  { %s750_s11 = smov [#allocation9]   ;;  %s751_s1 = smov [#allocation10]  }
   0xd   :  { %s58_s12 = sshll.u32 %s750_s11, 4  ;;  %s75_s13 = sshll.u32 %s751_s1, 4  ;;  %s59_s12 = int_to_ptr.vmem [resolvable:$true] %s58_s12  ;;  %s76_s13 = int_to_ptr.vmem [resolvable:$true] %s75_s13 }
   0xe   :  { %64 = dma.hbm_to_vmem [thread:$0]  %s57_s28, 1024, %s59_s12, [#allocation8], %s747_s23, %s747_s23, %s748_s24  }
   0xf   :  { %81 = dma.hbm_to_vmem [thread:$0]  %s74_s30, 1024, %s76_s13, [#allocation11], %s747_s23, %s747_s23, %s748_s24  }
  0x10   :  { %740 = dma.done.wait [#allocation6], 1024  }
  0x11   :  { %741 = vsyncadd [#allocation6], 4294966272 }
  0x12   :  { %742 = dma.done.wait [#allocation8], 2048  }
  0x13   :  { %743 = vsyncadd [#allocation8], 4294965248 }
  0x14   :  { %744 = dma.done.wait [#allocation11], 1024  }
  0x15   :  { %745 = vsyncadd [#allocation11], 4294966272  ;;  %v615_v1 = vld [vmem:[#allocation5 + $0x38] sm:$0xff]  ;;  %v614_v2 = vld [vmem:[#allocation5 + $0x30] sm:$0xff]  ;;  %v430_v43 = vlaneseq  ;;  %vm449_vm1 = vcmask 7168   ;;  %v752_v57 = vmov -inf  }
  0x16   :  { %255 = vmatpush.bf16.msra.mxu1 %v615_v1  ;;  %v631_v3 = vld [vmem:[#allocation9 + $0x38] sm:$0xff]  ;;  %v630_v6 = vld [vmem:[#allocation9 + $0x30] sm:$0xff]  ;;  %v613_v8 = vld [vmem:[#allocation5 + $0x28] sm:$0xff]  ;;  %451 = vst.msk [vmem:[#allocation3] sm:$0xff] %vm449_vm1, %v752_v57 }
  0x17   :  { %v607_v4 = vld [vmem:[#allocation10 + $0x38] sm:$0xff]  ;;  %415 = vmatpush.bf16.msra.mxu3 %v631_v3  ;;  %v606_v7 = vld [vmem:[#allocation10 + $0x30] sm:$0xff]  ;;  %v612_v10 = vld [vmem:[#allocation5 + $0x20] sm:$0xff]  ;;  %v431_v44 = vand.u32 127, %v430_v43 }
  0x18   :  { %v623_v5 = vld [vmem:[#allocation7 + $0x38] sm:$0xff]  ;;  %165 = vmatpush.bf16.msra.mxu0 %v607_v4  ;;  %v622_v9 = vld [vmem:[#allocation7 + $0x30] sm:$0xff]  ;;  %v629_v11 = vld [vmem:[#allocation9 + $0x28] sm:$0xff] }
  0x19   :  { %338 = vmatpush.bf16.msra.mxu2 %v623_v5  ;;  %v605_v12 = vld [vmem:[#allocation10 + $0x28] sm:$0xff]  ;;  %v628_v14 = vld [vmem:[#allocation9 + $0x20] sm:$0xff]  ;;  %v611_v16 = vld [vmem:[#allocation5 + $0x18] sm:$0xff]  ;;  %vm432_vm0 = vcmp.eq.s32.totalorder %v431_v44, 0 }
  0x1a   :  { %256 = vmatpush.bf16.msra.mxu1 %v614_v2  ;;  %v621_v13 = vld [vmem:[#allocation7 + $0x28] sm:$0xff]  ;;  %v604_v15 = vld [vmem:[#allocation10 + $0x20] sm:$0xff]  ;;  %v627_v18 = vld [vmem:[#allocation9 + $0x18] sm:$0xff] }
  0x1b   :  { %416 = vmatpush.bf16.msra.mxu3 %v630_v6  ;;  %v620_v17 = vld [vmem:[#allocation7 + $0x20] sm:$0xff]  ;;  %v603_v19 = vld [vmem:[#allocation10 + $0x18] sm:$0xff]  ;;  %v610_v20 = vld [vmem:[#allocation5 + $0x10] sm:$0xff] }
  0x1c   :  { %166 = vmatpush.bf16.msra.mxu0 %v606_v7  ;;  %v619_v21 = vld [vmem:[#allocation7 + $0x18] sm:$0xff]  ;;  %v626_v22 = vld [vmem:[#allocation9 + $0x10] sm:$0xff]  ;;  %v609_v24 = vld [vmem:[#allocation5 + $0x8] sm:$0xff] }
  0x1d   :  { %339 = vmatpush.bf16.msra.mxu2 %v622_v9  ;;  %v602_v23 = vld [vmem:[#allocation10 + $0x10] sm:$0xff]  ;;  %v625_v26 = vld [vmem:[#allocation9 + $0x8] sm:$0xff]  ;;  %v608_v28 = vld [vmem:[#allocation5] sm:$0xff] }
  0x1e   :  { %257 = vmatpush.bf16.msra.mxu1 %v613_v8  ;;  %v618_v25 = vld [vmem:[#allocation7 + $0x10] sm:$0xff]  ;;  %v601_v27 = vld [vmem:[#allocation10 + $0x8] sm:$0xff]  ;;  %v624_v29 = vld [vmem:[#allocation9] sm:$0xff] }
  0x1f   :  { %417 = vmatpush.bf16.msra.mxu3 %v629_v11  ;;  %v100_v30 = vld [vmem:[%s845_s0] sm:$0xf]  ;;  %v600_v32 = vld [vmem:[#allocation10] sm:$0xff]  ;;  %v452_v58 = vld [vmem:[#allocation3] sm:$0xff] }
  0x20   :  { %167 = vmatpush.bf16.msra.mxu0 %v605_v12  ;;  %v617_v31 = vld [vmem:[#allocation7 + $0x8] sm:$0xff]  ;;  %v616_v33 = vld [vmem:[#allocation7] sm:$0xff]  ;;  %v643_v62 = vld [vmem:[#allocation4] ss:$0 sm:$0xff] }
  0x21   :  { %340 = vmatpush.bf16.msra.mxu2 %v621_v13  ;;  %v639_v34 = vld [vmem:[%s847_s2] ss:$0 sm:$0xff] }
  0x22   :  { %258 = vmatpush.bf16.msra.mxu1 %v612_v10  ;;  %v641_v45 = vld [vmem:[%s854_s9] ss:$0 sm:$0xff] }
  0x23   :  { %418 = vmatpush.bf16.msra.mxu3 %v628_v14  ;;  %v640_v49 = vld [vmem:[%s849_s4] ss:$0 sm:$0xff] }
  0x24   :  { %168 = vmatpush.bf16.msra.mxu0 %v604_v15  ;;  %v642_v53 = vld [vmem:[%s851_s6] ss:$0 sm:$0xff] }
  0x25   :  { %341 = vmatpush.bf16.msra.mxu2 %v620_v17 }
  0x26   :  { %259 = vmatpush.bf16.msra.mxu1 %v611_v16 }
  0x27   :  { %419 = vmatpush.bf16.msra.mxu3 %v627_v18 }
  0x28   :  { %169 = vmatpush.bf16.msra.mxu0 %v603_v19 }
  0x29   :  { %342 = vmatpush.bf16.msra.mxu2 %v619_v21 }
  0x2a   :  { %260 = vmatpush.bf16.msra.mxu1 %v610_v20 }
  0x2b   :  { %420 = vmatpush.bf16.msra.mxu3 %v626_v22 }
  0x2c   :  { %170 = vmatpush.bf16.msra.mxu0 %v602_v23 }
  0x2d   :  { %343 = vmatpush.bf16.msra.mxu2 %v618_v25 }
  0x2e   :  { %261 = vmatpush.bf16.msra.mxu1 %v609_v24 }
  0x2f   :  { %421 = vmatpush.bf16.msra.mxu3 %v625_v26 }
  0x30   :  { %171 = vmatpush.bf16.msra.mxu0 %v601_v27 }
  0x31   :  { %344 = vmatpush.bf16.msra.mxu2 %v617_v31 }
  0x32   :  { %262 = vmatpush.bf16.msra.mxu1 %v608_v28 }
  0x33   :  { %422 = vmatpush.bf16.msra.mxu3 %v624_v29 }
  0x34   :  { %172 = vmatpush.bf16.msra.mxu0 %v600_v32 }
  0x35   :  { %263 = vmatmul.bf16.vlgmr.msra.gmra.mxu1 %v100_v30  ;;  %345 = vmatpush.bf16.msra.mxu2 %v616_v33 }
  0x36   :  { %423 = vmatmul.bf16.vlgmr.msra.gmra.mxu3 %v100_v30 }
  0x37   :  { %173 = vmatmul.bf16.vlgmr.msra.gmra.mxu0 %v100_v30 }
  0xb2   :  { %v264_v35 = vpop.f32.mrf.mxu1 }
  0xb3   :  { %v265_v36 = vadd.f32 %v639_v34, %v264_v35 }
  0xb4   :  { %v174_v42 = vpop.f32.mrf.mxu0 }
  0xb5   :  { %v268_v37 = vmax.f32 %v265_v36, 0.0  ;;  %v433_v47 = vsel %vm432_vm0, %v174_v42, 0.0  ;;  %v182_v48 = vadd.f32 %v641_v45, %v174_v42 }
  0xb6   :  { %434 = vadd.xlane.f32.xlu0 %v433_v47 }
  0xb7   :  { %v269_v38 = vpack.c.bf16 %v268_v37, %v268_v37  ;;  %453 = vmax.xlane.f32.xlu1 %v182_v48 }
  0xb9   :  { %346 = vmatmul.bf16.vlgmr.msra.gmra.mxu2 %v269_v38  ;;  %v424_v40 = vpop.f32.mrf.mxu3 }
  0xba   :  { %v266_v39 = vpop.f32.mrf.mxu1 }
  0xbc   :  { %v176_v46 = vpop.f32.mrf.mxu0 }
  0xc1   :  { %v426_v41 = vpop.f32.mrf.mxu3 }
 0x129   :  { %v435_v61 = vpop.xlane.xlu0 %434 }
 0x12a   :  { %v454_v59 = vpop.xlane.xlu1 %453 }
 0x12b   :  { %v455_v60 = vmax.f32 %v452_v58, %v454_v59 }
 0x12d   :  { %457 = vst.msk [vmem:[#allocation3] sm:$0xff] %vm449_vm1, %v455_v60 }
 0x134   :  { %v462_v2 = vld [vmem:[#allocation3] sm:$0xff] }
 0x13c   :  { %v347_v50 = vpop.f32.mrf.mxu2 }
 0x13d   :  { %v348_v51 = vadd.f32 %v640_v49, %v347_v50 }
 0x13f   :  { %v428_v52 = vadd.f32 %v424_v40, %v348_v51 }
 0x141   :  { %v429_v54 = vmax.f32 %v428_v52, 0.0 }
 0x143   :  { %v440_v55 = vmul.f32 %v642_v53, %v429_v54 }
 0x144   :  { %v349_v56 = vpop.f32.mrf.mxu2 }
 0x145   :  { %441 = vadd.xlane.f32.xlu0 %v440_v55 }
 0x1b8   :  { %v442_v63 = vpop.xlane.xlu0 %441 }
 0x1b9   :  { %v443_v0 = vadd.f32 %v442_v63, %v435_v61 }
 0x1bb   :  { %v448_v1 = vadd.f32 %v643_v62, %v443_v0 }
 0x1bd   :  { %450 = vst.msk [vmem:[#allocation2] sm:$0xff] %vm449_vm1, %v448_v1 }
 0x1c4   :  { %v461_v3 = vld [vmem:[#allocation2] sm:$0xff] }
 0x1c5   :  { %v463_v4 = vmax.f32 %v461_v3, %v462_v2 }
 0x1c7   :  { %464 = vst.msk [vmem:[%s855_s10] sm:$0xff] %vm449_vm1, %v463_v4 }
 0x1c8   :  { %469 = vsyncpa [#allocation6], 1 }
 0x1c9   :  { %470 = vsyncpa [#allocation8], 1 }
 0x1ca   :  { %471 = vsyncpa [#allocation11], 1 }

// kernel: _lambda_.1
= control target key start
LH: loop header
LB: loop body
LE: loop exit
PB: predicated region body
PF: predicated region fallthrough
CT: control target
= control target key end

     0   :  { %s845_s0 = inlined_call_operand.vmem [shape: bf16[8,128], index: 0, kind: input, shape index: {}]   ;;  %s846_s1 = inlined_call_operand.hbm [shape: bf16[128,128], index: 1, kind: input, shape index: {}]   ;;  %s847_s2 = inlined_call_operand.vmem [shape: f32[1,128], index: 2, kind: input, shape index: {}]   ;;  %s848_s3 = inlined_call_operand.hbm [shape: bf16[128,128], index: 3, kind: input, shape index: {}]   ;;  %s849_s4 = inlined_call_operand.vmem [shape: f32[1,128], index: 4, kind: input, shape index: {}]   ;;  %s850_s5 = inlined_call_operand.hbm [shape: bf16[128,128], index: 5, kind: input, shape index: {}]   ;;  %s851_s6 = inlined_call_operand.vmem [shape: f32[1,128], index: 6, kind: input, shape index: {}]   ;;  %s852_s7 = inlined_call_operand.<no memory space> [shape: f32[1,1], index: 7, kind: input, shape index: {}]   ;;  %s853_s8 = inlined_call_operand.hbm [shape: bf16[128,128], index: 8, kind: input, shape index: {}]   ;;  %s854_s9 = inlined_call_operand.vmem [shape: f32[1,128], index: 9, kind: input, shape index: {}]   ;;  %s855_s10 = inlined_call_operand.vmem [shape: f32[8,1], index: 10, kind: output, shape index: {}]  }
   0x1   :  { %v15_v0 = vstv %s852_s7 }
   0x2   :  { %16 = vst [vmem:[#allocation4] sm:$0x1] %v15_v0 }
   0x3   :  { %17 = vsyncpa [#allocation6], 0 }
   0x4   :  { %18 = vsyncpa [#allocation8], 0 }
   0x5   :  { %19 = vsyncpa [#allocation11], 0  ;;  %s41_s17 = sshll.u32 %s848_s3, 4  ;;  %s746_s18 = smov [#allocation7]   ;;  %s42_s17 = int_to_ptr.hbm [resolvable:$true] %s41_s17 }
   0x6   :  { %s43_s19 = sshll.u32 %s746_s18, 4  ;;  %s26_s22 = sshll.u32 %s846_s1, 4  ;;  %s44_s19 = int_to_ptr.vmem [resolvable:$true] %s43_s19  ;;  %s27_s22 = int_to_ptr.hbm [resolvable:$true] %s26_s22 }
   0x7   :  { %s747_s23 = smov 64   ;;  %s748_s24 = smov 4  }
   0x8   :  { %49 = dma.hbm_to_vmem [thread:$0]  %s42_s17, 1024, %s44_s19, [#allocation8], %s747_s23, %s747_s23, %s748_s24  }
   0x9   :  { %s749_s7 = smov [#allocation5]   ;;  %s56_s28 = sshll.u32 %s850_s5, 4  ;;  %s57_s28 = int_to_ptr.hbm [resolvable:$true] %s56_s28 }
   0xa   :  { %s28_s25 = sshll.u32 %s749_s7, 4  ;;  %s73_s30 = sshll.u32 %s853_s8, 4  ;;  %s29_s25 = int_to_ptr.vmem [resolvable:$true] %s28_s25  ;;  %s74_s30 = int_to_ptr.hbm [resolvable:$true] %s73_s30 }
   0xb   :  { %34 = dma.hbm_to_vmem [thread:$0]  %s27_s22, 1024, %s29_s25, [#allocation6], %s747_s23, %s747_s23, %s748_s24  }
   0xc   :  { %s750_s11 = smov [#allocation9]   ;;  %s751_s1 = smov [#allocation10]  }
   0xd   :  { %s58_s12 = sshll.u32 %s750_s11, 4  ;;  %s75_s13 = sshll.u32 %s751_s1, 4  ;;  %s59_s12 = int_to_ptr.vmem [resolvable:$true] %s58_s12  ;;  %s76_s13 = int_to_ptr.vmem [resolvable:$true] %s75_s13 }
   0xe   :  { %64 = dma.hbm_to_vmem [thread:$0]  %s57_s28, 1024, %s59_s12, [#allocation8], %s747_s23, %s747_s23, %s748_s24  }
   0xf   :  { %81 = dma.hbm_to_vmem [thread:$0]  %s74_s30, 1024, %s76_s13, [#allocation11], %s747_s23, %s747_s23, %s748_s24  }
  0x10   :  { %740 = dma.done.wait [#allocation6], 1024  }
  0x11   :  { %741 = vsyncadd [#allocation6], 4294966272 }
  0x12   :  { %742 = dma.done.wait [#allocation8], 2048  }
  0x13   :  { %743 = vsyncadd [#allocation8], 4294965248 }
  0x14   :  { %744 = dma.done.wait [#allocation11], 1024  }
  0x15   :  { %745 = vsyncadd [#allocation11], 4294966272  ;;  %v615_v1 = vld [vmem:[#allocation5 + $0x38] sm:$0xff]  ;;  %v614_v2 = vld [vmem:[#allocation5 + $0x30] sm:$0xff]  ;;  %v430_v43 = vlaneseq  ;;  %vm449_vm1 = vcmask 7168   ;;  %v752_v57 = vmov -inf  }
  0x16   :  { %255 = vmatpush.bf16.msra.mxu1 %v615_v1  ;;  %v631_v3 = vld [vmem:[#allocation9 + $0x38] sm:$0xff]  ;;  %v630_v6 = vld [vmem:[#allocation9 + $0x30] sm:$0xff]  ;;  %v613_v8 = vld [vmem:[#allocation5 + $0x28] sm:$0xff]  ;;  %451 = vst.msk [vmem:[#allocation3] sm:$0xff] %vm449_vm1, %v752_v57 }
  0x17   :  { %v607_v4 = vld [vmem:[#allocation10 + $0x38] sm:$0xff]  ;;  %415 = vmatpush.bf16.msra.mxu3 %v631_v3  ;;  %v606_v7 = vld [vmem:[#allocation10 + $0x30] sm:$0xff]  ;;  %v612_v10 = vld [vmem:[#allocation5 + $0x20] sm:$0xff]  ;;  %v431_v44 = vand.u32 127, %v430_v43 }
  0x18   :  { %v623_v5 = vld [vmem:[#allocation7 + $0x38] sm:$0xff]  ;;  %165 = vmatpush.bf16.msra.mxu0 %v607_v4  ;;  %v622_v9 = vld [vmem:[#allocation7 + $0x30] sm:$0xff]  ;;  %v629_v11 = vld [vmem:[#allocation9 + $0x28] sm:$0xff] }
  0x19   :  { %338 = vmatpush.bf16.msra.mxu2 %v623_v5  ;;  %v605_v12 = vld [vmem:[#allocation10 + $0x28] sm:$0xff]  ;;  %v628_v14 = vld [vmem:[#allocation9 + $0x20] sm:$0xff]  ;;  %v611_v16 = vld [vmem:[#allocation5 + $0x18] sm:$0xff]  ;;  %vm432_vm0 = vcmp.eq.s32.totalorder %v431_v44, 0 }
  0x1a   :  { %256 = vmatpush.bf16.msra.mxu1 %v614_v2  ;;  %v621_v13 = vld [vmem:[#allocation7 + $0x28] sm:$0xff]  ;;  %v604_v15 = vld [vmem:[#allocation10 + $0x20] sm:$0xff]  ;;  %v627_v18 = vld [vmem:[#allocation9 + $0x18] sm:$0xff] }
  0x1b   :  { %416 = vmatpush.bf16.msra.mxu3 %v630_v6  ;;  %v620_v17 = vld [vmem:[#allocation7 + $0x20] sm:$0xff]  ;;  %v603_v19 = vld [vmem:[#allocation10 + $0x18] sm:$0xff]  ;;  %v610_v20 = vld [vmem:[#allocation5 + $0x10] sm:$0xff] }
  0x1c   :  { %166 = vmatpush.bf16.msra.mxu0 %v606_v7  ;;  %v619_v21 = vld [vmem:[#allocation7 + $0x18] sm:$0xff]  ;;  %v626_v22 = vld [vmem:[#allocation9 + $0x10] sm:$0xff]  ;;  %v609_v24 = vld [vmem:[#allocation5 + $0x8] sm:$0xff] }
  0x1d   :  { %339 = vmatpush.bf16.msra.mxu2 %v622_v9  ;;  %v602_v23 = vld [vmem:[#allocation10 + $0x10] sm:$0xff]  ;;  %v625_v26 = vld [vmem:[#allocation9 + $0x8] sm:$0xff]  ;;  %v608_v28 = vld [vmem:[#allocation5] sm:$0xff] }
  0x1e   :  { %257 = vmatpush.bf16.msra.mxu1 %v613_v8  ;;  %v618_v25 = vld [vmem:[#allocation7 + $0x10] sm:$0xff]  ;;  %v601_v27 = vld [vmem:[#allocation10 + $0x8] sm:$0xff]  ;;  %v624_v29 = vld [vmem:[#allocation9] sm:$0xff] }
  0x1f   :  { %417 = vmatpush.bf16.msra.mxu3 %v629_v11  ;;  %v100_v30 = vld [vmem:[%s845_s0] sm:$0xf]  ;;  %v600_v32 = vld [vmem:[#allocation10] sm:$0xff]  ;;  %v452_v58 = vld [vmem:[#allocation3] sm:$0xff] }
  0x20   :  { %167 = vmatpush.bf16.msra.mxu0 %v605_v12  ;;  %v617_v31 = vld [vmem:[#allocation7 + $0x8] sm:$0xff]  ;;  %v616_v33 = vld [vmem:[#allocation7] sm:$0xff]  ;;  %v643_v62 = vld [vmem:[#allocation4] ss:$0 sm:$0xff] }
  0x21   :  { %340 = vmatpush.bf16.msra.mxu2 %v621_v13  ;;  %v639_v34 = vld [vmem:[%s847_s2] ss:$0 sm:$0xff] }
  0x22   :  { %258 = vmatpush.bf16.msra.mxu1 %v612_v10  ;;  %v641_v45 = vld [vmem:[%s854_s9] ss:$0 sm:$0xff] }
  0x23   :  { %418 = vmatpush.bf16.msra.mxu3 %v628_v14  ;;  %v640_v49 = vld [vmem:[%s849_s4] ss:$0 sm:$0xff] }
  0x24   :  { %168 = vmatpush.bf16.msra.mxu0 %v604_v15  ;;  %v642_v53 = vld [vmem:[%s851_s6] ss:$0 sm:$0xff] }
  0x25   :  { %341 = vmatpush.bf16.msra.mxu2 %v620_v17 }
  0x26   :  { %259 = vmatpush.bf16.msra.mxu1 %v611_v16 }
  0x27   :  { %419 = vmatpush.bf16.msra.mxu3 %v627_v18 }
  0x28   :  { %169 = vmatpush.bf16.msra.mxu0 %v603_v19 }
  0x29   :  { %342 = vmatpush.bf16.msra.mxu2 %v619_v21 }
  0x2a   :  { %260 = vmatpush.bf16.msra.mxu1 %v610_v20 }
  0x2b   :  { %420 = vmatpush.bf16.msra.mxu3 %v626_v22 }
  0x2c   :  { %170 = vmatpush.bf16.msra.mxu0 %v602_v23 }
  0x2d   :  { %343 = vmatpush.bf16.msra.mxu2 %v618_v25 }
  0x2e   :  { %261 = vmatpush.bf16.msra.mxu1 %v609_v24 }
  0x2f   :  { %421 = vmatpush.bf16.msra.mxu3 %v625_v26 }
  0x30   :  { %171 = vmatpush.bf16.msra.mxu0 %v601_v27 }
  0x31   :  { %344 = vmatpush.bf16.msra.mxu2 %v617_v31 }
  0x32   :  { %262 = vmatpush.bf16.msra.mxu1 %v608_v28 }
  0x33   :  { %422 = vmatpush.bf16.msra.mxu3 %v624_v29 }
  0x34   :  { %172 = vmatpush.bf16.msra.mxu0 %v600_v32 }
  0x35   :  { %263 = vmatmul.bf16.vlgmr.msra.gmra.mxu1 %v100_v30  ;;  %345 = vmatpush.bf16.msra.mxu2 %v616_v33 }
  0x36   :  { %423 = vmatmul.bf16.vlgmr.msra.gmra.mxu3 %v100_v30 }
  0x37   :  { %173 = vmatmul.bf16.vlgmr.msra.gmra.mxu0 %v100_v30 }
  0xb2   :  { %v264_v35 = vpop.f32.mrf.mxu1 }
  0xb3   :  { %v265_v36 = vadd.f32 %v639_v34, %v264_v35 }
  0xb4   :  { %v174_v42 = vpop.f32.mrf.mxu0 }
  0xb5   :  { %v268_v37 = vmax.f32 %v265_v36, 0.0  ;;  %v433_v47 = vsel %vm432_vm0, %v174_v42, 0.0  ;;  %v182_v48 = vadd.f32 %v641_v45, %v174_v42 }
  0xb6   :  { %434 = vadd.xlane.f32.xlu0 %v433_v47 }
  0xb7   :  { %v269_v38 = vpack.c.bf16 %v268_v37, %v268_v37  ;;  %453 = vmax.xlane.f32.xlu1 %v182_v48 }
  0xb9   :  { %346 = vmatmul.bf16.vlgmr.msra.gmra.mxu2 %v269_v38  ;;  %v424_v40 = vpop.f32.mrf.mxu3 }
  0xba   :  { %v266_v39 = vpop.f32.mrf.mxu1 }
  0xbc   :  { %v176_v46 = vpop.f32.mrf.mxu0 }
  0xc1   :  { %v426_v41 = vpop.f32.mrf.mxu3 }
 0x129   :  { %v435_v61 = vpop.xlane.xlu0 %434 }
 0x12a   :  { %v454_v59 = vpop.xlane.xlu1 %453 }
 0x12b   :  { %v455_v60 = vmax.f32 %v452_v58, %v454_v59 }
 0x12d   :  { %457 = vst.msk [vmem:[#allocation3] sm:$0xff] %vm449_vm1, %v455_v60 }
 0x134   :  { %v462_v2 = vld [vmem:[#allocation3] sm:$0xff] }
 0x13c   :  { %v347_v50 = vpop.f32.mrf.mxu2 }
 0x13d   :  { %v348_v51 = vadd.f32 %v640_v49, %v347_v50 }
 0x13f   :  { %v428_v52 = vadd.f32 %v424_v40, %v348_v51 }
 0x141   :  { %v429_v54 = vmax.f32 %v428_v52, 0.0 }
 0x143   :  { %v440_v55 = vmul.f32 %v642_v53, %v429_v54 }
 0x144   :  { %v349_v56 = vpop.f32.mrf.mxu2 }
 0x145   :  { %441 = vadd.xlane.f32.xlu0 %v440_v55 }
 0x1b8   :  { %v442_v63 = vpop.xlane.xlu0 %441 }
 0x1b9   :  { %v443_v0 = vadd.f32 %v442_v63, %v435_v61 }
 0x1bb   :  { %v448_v1 = vadd.f32 %v643_v62, %v443_v0 }
 0x1bd   :  { %450 = vst.msk [vmem:[#allocation2] sm:$0xff] %vm449_vm1, %v448_v1 }
 0x1c4   :  { %v461_v3 = vld [vmem:[#allocation2] sm:$0xff] }
 0x1c5   :  { %v463_v4 = vmax.f32 %v461_v3, %v462_v2 }
 0x1c7   :  { %464 = vst.msk [vmem:[%s855_s10] sm:$0xff] %vm449_vm1, %v463_v4 }
 0x1c8   :  { %469 = vsyncpa [#allocation6], 1 }
 0x1c9   :  { %470 = vsyncpa [#allocation8], 1 }
 0x1ca   :  { %471 = vsyncpa [#allocation11], 1 }

</bundles_post_ra>
